<compile_context>
chip_gen: v7x
topology: tpu7x:2x2x1
jax: 0.10.0
libtpu: 0.0.40
codegen_flags: <defaults>
</compile_context>

<pallas_src>
import functools

import jax
import jax.numpy as jnp
from jax.experimental import pallas as pl
from jax.experimental.pallas import tpu as pltpu

SUBLANE = 8
LANE = 128


def _round_up(x, m):
    return ((x + m - 1) // m) * m


def rnn_classifier_kernel(tok_ref, emb_ref, wih_ref, whh_ref, b_ref, who_ref,
                          bo_ref, out_ref, *, seq_len, batch, batch_pad):
    """Whole forward pass in one kernel invocation (no grid).

    tok_ref : (S*BP, 1) int32  time-major token ids, batch padded to BP
    emb_ref : (VP, E)   f32    embedding table, vocab padded to VP
    wih_ref : (E, H)    f32    input->hidden weight (pre-transposed)
    whh_ref : (H, H)    f32    hidden->hidden weight (pre-transposed)
    b_ref   : (1, H)    f32    b_ih + b_hh (folded)
    who_ref : (H, OP)   f32    hidden->output weight, lane-padded to OP
    bo_ref  : (1, OP)   f32    output bias, lane-padded
    out_ref : (BP, OP)  f32    log-probabilities (padding sliced off outside)
    """
    sb = seq_len * batch_pad
    vocab_pad = emb_ref.shape[0]

    # ---- Fused embedding gather as a one-hot MXU matmul (small vocab). -----
    tok = tok_ref[...]                                            # (S*BP, 1)
    vocab_iota = jax.lax.broadcasted_iota(jnp.int32, (sb, vocab_pad), 1)
    onehot = (vocab_iota == tok).astype(jnp.float32)              # (S*BP, VP)
    x = jnp.dot(onehot, emb_ref[...],
                preferred_element_type=jnp.float32)               # (S*BP, E)

    # ---- Hoisted input projection: one tall matmul for all timesteps. ------
    xp = (jnp.dot(x, wih_ref[...], preferred_element_type=jnp.float32)
          + b_ref[...])                                           # (S*BP, H)

    w_hh = whh_ref[...]                                           # (H, H) f32

    # ---- Serial recurrence, statically unrolled; first step peeled since
    # h0 == 0 (the zeros @ W_hh matmul contributes nothing). h lives in vregs.
    h = jnp.tanh(xp[0:batch_pad, :])                              # (BP, H)
    for t in range(1, seq_len):
        rec = jnp.dot(h, w_hh, preferred_element_type=jnp.float32)
        h = jnp.tanh(xp[t * batch_pad:(t + 1) * batch_pad, :] + rec)

    # ---- Head: lane-dense padded output. -----------------------------------
    logits = (jnp.dot(h, who_ref[...], preferred_element_type=jnp.float32)
              + bo_ref[...])                                      # (BP, OP)

    # PyTorch: LogSoftmax(dim=1) on a (1, B, O) tensor -> normalize over the
    # BATCH axis.  Padded batch rows are masked out of the reduction.
    row_ids = jax.lax.broadcasted_iota(jnp.int32, logits.shape, 0)
    masked = jnp.where(row_ids < batch, logits, jnp.float32(-1e30))
    m = jnp.max(masked, axis=0, keepdims=True)
    lse = jnp.log(jnp.sum(jnp.exp(masked - m), axis=0, keepdims=True)) + m
    out_ref[...] = (logits - lse).astype(out_ref.dtype)


def prepare_params(params):
    """One-time weight preprocessing (hoisted out of the per-call forward)."""
    emb = params["embedding"].astype(jnp.float32)                 # (V, E)
    vocab, _ = emb.shape
    hidden = params["w_hh"].shape[0]
    out_dim = params["w_ho"].shape[0]
    vocab_p = _round_up(vocab, LANE)
    out_p = _round_up(out_dim, LANE)
    return {
        "emb_p": jnp.pad(emb, ((0, vocab_p - vocab), (0, 0))),    # (VP, E)
        "wih_t": params["w_ih"].T.astype(jnp.float32),            # (E, H)
        "whh_t": params["w_hh"].T.astype(jnp.float32),            # (H, H)
        "bias": (params["b_ih"] + params["b_hh"])
                .reshape(1, hidden).astype(jnp.float32),          # (1, H)
        "who_p": jnp.pad(params["w_ho"].T.astype(jnp.float32),
                         ((0, 0), (0, out_p - out_dim))),         # (H, OP)
        "bo_p": jnp.pad(params["b_ho"].reshape(1, out_dim).astype(jnp.float32),
                        ((0, 0), (0, out_p - out_dim))),          # (1, OP)
    }


@functools.partial(jax.jit, static_argnames=("output_dim",))
def rnn_classifier_forward(tokens, prep, output_dim):
    """tokens: int32 (B, S).  Returns (B, output_dim) log-'probabilities'."""
    B, S = tokens.shape
    OP = prep["who_p"].shape[1]
    BP = _round_up(max(B, SUBLANE), SUBLANE)

    # Cheap int32-only glue: time-major, batch padded with token 0 (padded
    # rows are excluded from the softmax reduction in-kernel), column layout
    # for the in-kernel one-hot gather.
    tok_sm = jnp.transpose(tokens, (1, 0))                        # (S, B)
    tok_p = jnp.pad(tok_sm, ((0, 0), (0, BP - B)))                # (S, BP)
    tok_col = tok_p.reshape(S * BP, 1).astype(jnp.int32)          # (S*BP, 1)

    kernel = functools.partial(rnn_classifier_kernel, seq_len=S, batch=B,
                               batch_pad=BP)
    vmem = pl.BlockSpec(memory_space=pltpu.MemorySpace.VMEM)

    out_padded = pl.pallas_call(
        kernel,
        out_shape=jax.ShapeDtypeStruct((BP, OP), jnp.float32),
        in_specs=[vmem] * 7,
        out_specs=vmem,
    )(tok_col, prep["emb_p"], prep["wih_t"], prep["whh_t"], prep["bias"],
      prep["who_p"], prep["bo_p"])

    return out_padded[:B, :output_dim]                            # (B, O)


def init_params(key, input_dim, embedding_dim, hidden_dim, output_dim):
    ks = jax.random.split(key, 7)
    k = 1.0 / jnp.sqrt(hidden_dim)
    return {
        "embedding": jax.random.normal(ks[0], (input_dim, embedding_dim),
                                       jnp.float32),
        "w_ih": jax.random.uniform(ks[1], (hidden_dim, embedding_dim),
                                   jnp.float32, -k, k),
        "w_hh": jax.random.uniform(ks[2], (hidden_dim, hidden_dim),
                                   jnp.float32, -k, k),
        "b_ih": jax.random.uniform(ks[3], (hidden_dim,), jnp.float32, -k, k),
        "b_hh": jax.random.uniform(ks[4], (hidden_dim,), jnp.float32, -k, k),
        "w_ho": jax.random.uniform(ks[5], (output_dim, hidden_dim),
                                   jnp.float32, -k, k),
        "b_ho": jax.random.uniform(ks[6], (output_dim,), jnp.float32, -k, k),
    }


def reference_forward(tokens, params):
    """Pure-JAX reference matching the PyTorch module in eval mode."""
    x = jnp.take(params["embedding"], tokens, axis=0)             # (B, S, E)
    B, S, _ = x.shape
    H = params["w_hh"].shape[0]
    hp = jax.lax.Precision.HIGHEST
    h = jnp.zeros((B, H), jnp.float32)
    for t in range(S):
        h = jnp.tanh(jnp.dot(x[:, t, :], params["w_ih"].T, precision=hp)
                     + params["b_ih"]
                     + jnp.dot(h, params["w_hh"].T, precision=hp)
                     + params["b_hh"])
    logits = jnp.dot(h, params["w_ho"].T, precision=hp) + params["b_ho"]
    # LogSoftmax(dim=1) on (1, B, O) == normalize over the batch axis.
    return jax.nn.log_softmax(logits, axis=0)


if __name__ == "__main__":
    INPUT_DIM = 50      # vocab size
    EMB_DIM = 16
    HIDDEN_DIM = 32
    OUTPUT_DIM = 4
    BATCH = 2
    SEQ = 8

    key = jax.random.PRNGKey(0)
    k_param, k_tok = jax.random.split(key)
    params = init_params(k_param, INPUT_DIM, EMB_DIM, HIDDEN_DIM, OUTPUT_DIM)
    tokens = jax.random.randint(k_tok, (BATCH, SEQ), 0, INPUT_DIM, jnp.int32)

    prep = prepare_params(params)            # one-time weight preprocessing
    out = rnn_classifier_forward(tokens, prep, output_dim=OUTPUT_DIM)
    out = jax.block_until_ready(out)

    assert out.shape == (BATCH, OUTPUT_DIM)
    assert bool(jnp.all(jnp.isfinite(out)))

    ref = reference_forward(tokens, params)
    assert bool(jnp.allclose(out, ref, atol=1e-3, rtol=1e-3)), (
        f"max abs err {float(jnp.max(jnp.abs(out - ref)))}")

    print("KERNEL_OK")
</pallas_src>

<mosaic_0001>
module attributes {stable_mosaic.version = 11 : i64} {
  func.func @rnn_classifier_kernel(%arg0: memref<64x1xi32, #tpu.memory_space<vmem>>, %arg1: memref<128x16xf32, #tpu.memory_space<vmem>>, %arg2: memref<16x32xf32, #tpu.memory_space<vmem>>, %arg3: memref<32x32xf32, #tpu.memory_space<vmem>>, %arg4: memref<1x32xf32, #tpu.memory_space<vmem>>, %arg5: memref<32x128xf32, #tpu.memory_space<vmem>>, %arg6: memref<1x128xf32, #tpu.memory_space<vmem>>, %arg7: memref<8x128xf32, #tpu.memory_space<vmem>>) attributes {dimension_semantics = [], scalar_prefetch = 0 : i64, scratch_operands = 0 : i64, tpu.core_type = #tpu.core_type<tc>} {
    %c0 = arith.constant 0 : index
    %c0_0 = arith.constant 0 : index
    %0 = vector.load %arg0[%c0, %c0_0] : memref<64x1xi32, #tpu.memory_space<vmem>>, vector<64x1xi32>
    %1 = tpu.iota {dimensions = array<i32: 1>} : vector<64x128xi32>
    %2 = vector.broadcast %0 : vector<64x1xi32> to vector<64x128xi32>
    %3 = arith.cmpi eq, %1, %2 : vector<64x128xi32>
    %4 = arith.extui %3 : vector<64x128xi1> to vector<64x128xi32>
    %5 = arith.sitofp %4 : vector<64x128xi32> to vector<64x128xf32>
    %c0_1 = arith.constant 0 : index
    %c0_2 = arith.constant 0 : index
    %6 = vector.load %arg1[%c0_1, %c0_2] : memref<128x16xf32, #tpu.memory_space<vmem>>, vector<128x16xf32>
    %cst = arith.constant dense<0.000000e+00> : vector<64x16xf32>
    %7 = tpu.matmul %5, %6, %cst {dimension_numbers = #tpu.dot_dimension_numbers<[1], [0], [0], [1], [0, 0, 1, 1], [], []>} : vector<64x128xf32>, vector<128x16xf32>, vector<64x16xf32> -> vector<64x16xf32>
    %c0_3 = arith.constant 0 : index
    %c0_4 = arith.constant 0 : index
    %8 = vector.load %arg2[%c0_3, %c0_4] : memref<16x32xf32, #tpu.memory_space<vmem>>, vector<16x32xf32>
    %cst_5 = arith.constant dense<0.000000e+00> : vector<64x32xf32>
    %9 = tpu.matmul %7, %8, %cst_5 {dimension_numbers = #tpu.dot_dimension_numbers<[1], [0], [0], [1], [0, 0, 1, 1], [], []>} : vector<64x16xf32>, vector<16x32xf32>, vector<64x32xf32> -> vector<64x32xf32>
    %c0_6 = arith.constant 0 : index
    %c0_7 = arith.constant 0 : index
    %10 = vector.load %arg4[%c0_6, %c0_7] : memref<1x32xf32, #tpu.memory_space<vmem>>, vector<1x32xf32>
    %11 = vector.broadcast %10 : vector<1x32xf32> to vector<64x32xf32>
    %12 = arith.addf %9, %11 : vector<64x32xf32>
    %c0_8 = arith.constant 0 : index
    %c0_9 = arith.constant 0 : index
    %13 = vector.load %arg3[%c0_8, %c0_9] : memref<32x32xf32, #tpu.memory_space<vmem>>, vector<32x32xf32>
    %14 = vector.extract_strided_slice %12 {offsets = [0, 0], sizes = [8, 32], strides = [1, 1]} : vector<64x32xf32> to vector<8x32xf32>
    %15 = math.tanh %14 : vector<8x32xf32>
    %cst_10 = arith.constant dense<0.000000e+00> : vector<8x32xf32>
    %16 = tpu.matmul %15, %13, %cst_10 {dimension_numbers = #tpu.dot_dimension_numbers<[1], [0], [0], [1], [0, 0, 1, 1], [], []>} : vector<8x32xf32>, vector<32x32xf32>, vector<8x32xf32> -> vector<8x32xf32>
    %17 = vector.extract_strided_slice %12 {offsets = [8, 0], sizes = [8, 32], strides = [1, 1]} : vector<64x32xf32> to vector<8x32xf32>
    %18 = arith.addf %17, %16 : vector<8x32xf32>
    %19 = math.tanh %18 : vector<8x32xf32>
    %cst_11 = arith.constant dense<0.000000e+00> : vector<8x32xf32>
    %20 = tpu.matmul %19, %13, %cst_11 {dimension_numbers = #tpu.dot_dimension_numbers<[1], [0], [0], [1], [0, 0, 1, 1], [], []>} : vector<8x32xf32>, vector<32x32xf32>, vector<8x32xf32> -> vector<8x32xf32>
    %21 = vector.extract_strided_slice %12 {offsets = [16, 0], sizes = [8, 32], strides = [1, 1]} : vector<64x32xf32> to vector<8x32xf32>
    %22 = arith.addf %21, %20 : vector<8x32xf32>
    %23 = math.tanh %22 : vector<8x32xf32>
    %cst_12 = arith.constant dense<0.000000e+00> : vector<8x32xf32>
    %24 = tpu.matmul %23, %13, %cst_12 {dimension_numbers = #tpu.dot_dimension_numbers<[1], [0], [0], [1], [0, 0, 1, 1], [], []>} : vector<8x32xf32>, vector<32x32xf32>, vector<8x32xf32> -> vector<8x32xf32>
    %25 = vector.extract_strided_slice %12 {offsets = [24, 0], sizes = [8, 32], strides = [1, 1]} : vector<64x32xf32> to vector<8x32xf32>
    %26 = arith.addf %25, %24 : vector<8x32xf32>
    %27 = math.tanh %26 : vector<8x32xf32>
    %cst_13 = arith.constant dense<0.000000e+00> : vector<8x32xf32>
    %28 = tpu.matmul %27, %13, %cst_13 {dimension_numbers = #tpu.dot_dimension_numbers<[1], [0], [0], [1], [0, 0, 1, 1], [], []>} : vector<8x32xf32>, vector<32x32xf32>, vector<8x32xf32> -> vector<8x32xf32>
    %29 = vector.extract_strided_slice %12 {offsets = [32, 0], sizes = [8, 32], strides = [1, 1]} : vector<64x32xf32> to vector<8x32xf32>
    %30 = arith.addf %29, %28 : vector<8x32xf32>
    %31 = math.tanh %30 : vector<8x32xf32>
    %cst_14 = arith.constant dense<0.000000e+00> : vector<8x32xf32>
    %32 = tpu.matmul %31, %13, %cst_14 {dimension_numbers = #tpu.dot_dimension_numbers<[1], [0], [0], [1], [0, 0, 1, 1], [], []>} : vector<8x32xf32>, vector<32x32xf32>, vector<8x32xf32> -> vector<8x32xf32>
    %33 = vector.extract_strided_slice %12 {offsets = [40, 0], sizes = [8, 32], strides = [1, 1]} : vector<64x32xf32> to vector<8x32xf32>
    %34 = arith.addf %33, %32 : vector<8x32xf32>
    %35 = math.tanh %34 : vector<8x32xf32>
    %cst_15 = arith.constant dense<0.000000e+00> : vector<8x32xf32>
    %36 = tpu.matmul %35, %13, %cst_15 {dimension_numbers = #tpu.dot_dimension_numbers<[1], [0], [0], [1], [0, 0, 1, 1], [], []>} : vector<8x32xf32>, vector<32x32xf32>, vector<8x32xf32> -> vector<8x32xf32>
    %37 = vector.extract_strided_slice %12 {offsets = [48, 0], sizes = [8, 32], strides = [1, 1]} : vector<64x32xf32> to vector<8x32xf32>
    %38 = arith.addf %37, %36 : vector<8x32xf32>
    %39 = math.tanh %38 : vector<8x32xf32>
    %cst_16 = arith.constant dense<0.000000e+00> : vector<8x32xf32>
    %40 = tpu.matmul %39, %13, %cst_16 {dimension_numbers = #tpu.dot_dimension_numbers<[1], [0], [0], [1], [0, 0, 1, 1], [], []>} : vector<8x32xf32>, vector<32x32xf32>, vector<8x32xf32> -> vector<8x32xf32>
    %41 = vector.extract_strided_slice %12 {offsets = [56, 0], sizes = [8, 32], strides = [1, 1]} : vector<64x32xf32> to vector<8x32xf32>
    %42 = arith.addf %41, %40 : vector<8x32xf32>
    %43 = math.tanh %42 : vector<8x32xf32>
    %c0_17 = arith.constant 0 : index
    %c0_18 = arith.constant 0 : index
    %44 = vector.load %arg5[%c0_17, %c0_18] : memref<32x128xf32, #tpu.memory_space<vmem>>, vector<32x128xf32>
    %cst_19 = arith.constant dense<0.000000e+00> : vector<8x128xf32>
    %45 = tpu.matmul %43, %44, %cst_19 {dimension_numbers = #tpu.dot_dimension_numbers<[1], [0], [0], [1], [0, 0, 1, 1], [], []>} : vector<8x32xf32>, vector<32x128xf32>, vector<8x128xf32> -> vector<8x128xf32>
    %c0_20 = arith.constant 0 : index
    %c0_21 = arith.constant 0 : index
    %46 = vector.load %arg6[%c0_20, %c0_21] : memref<1x128xf32, #tpu.memory_space<vmem>>, vector<1x128xf32>
    %47 = vector.broadcast %46 : vector<1x128xf32> to vector<8x128xf32>
    %48 = arith.addf %45, %47 : vector<8x128xf32>
    %49 = tpu.iota {dimensions = array<i32: 0>} : vector<8x128xi32>
    %c2_i32 = arith.constant 2 : i32
    %50 = vector.broadcast %c2_i32 : i32 to vector<8x128xi32>
    %51 = arith.cmpi slt, %49, %50 : vector<8x128xi32>
    %cst_22 = arith.constant -1.000000e+30 : f32
    %52 = vector.broadcast %cst_22 : f32 to vector<8x128xf32>
    %53 = arith.select %51, %48, %52 : vector<8x128xi1>, vector<8x128xf32>
    %cst_23 = arith.constant dense<0xFF800000> : vector<128xf32>
    %54 = vector.multi_reduction <maximumf>, %53, %cst_23 [0] : vector<8x128xf32> to vector<128xf32>
    %55 = vector.shape_cast %54 : vector<128xf32> to vector<1x128xf32>
    %56 = vector.broadcast %55 : vector<1x128xf32> to vector<8x128xf32>
    %57 = arith.subf %53, %56 : vector<8x128xf32>
    %58 = math.exp %57 : vector<8x128xf32>
    %cst_24 = arith.constant dense<0.000000e+00> : vector<128xf32>
    %59 = vector.multi_reduction <add>, %58, %cst_24 [0] : vector<8x128xf32> to vector<128xf32>
    %60 = vector.shape_cast %59 : vector<128xf32> to vector<1x128xf32>
    %61 = math.log %60 : vector<1x128xf32>
    %62 = arith.addf %61, %55 : vector<1x128xf32>
    %63 = vector.broadcast %62 : vector<1x128xf32> to vector<8x128xf32>
    %64 = arith.subf %48, %63 : vector<8x128xf32>
    %c0_25 = arith.constant 0 : index
    %c0_26 = arith.constant 0 : index
    %65 = vector.load %arg7[%c0_25, %c0_26] : memref<8x128xf32, #tpu.memory_space<vmem>>, vector<8x128xf32>
    tpu.vector_store %arg7[%c0_25, %c0_26], %64 {strides = array<i32>} : memref<8x128xf32, #tpu.memory_space<vmem>>, vector<8x128xf32>,
    return
  }
}

</mosaic_0001>

<bundles_post_ra>
// kernel: rnn_classifier_forward.1
= control target key start
LH: loop header
LB: loop body
LE: loop exit
PB: predicated region body
PF: predicated region fallthrough
CT: control target
= control target key end

     0   :  { %v1354_v0 = vmov 0   ;;  %v34_v36 = vlaneseq  ;;  %v1355_v40 = vmov 1.0   ;;  %v1356_v47 = vmov 0.0|0.0   ;;  %s1581_s0 = inlined_call_operand.vmem [shape: s32[64,1], index: 0, kind: input, shape index: {}]   ;;  %s1582_s1 = inlined_call_operand.vmem [shape: f32[128,16], index: 1, kind: input, shape index: {}]   ;;  %s1583_s2 = inlined_call_operand.vmem [shape: f32[16,32], index: 2, kind: input, shape index: {}]   ;;  %s1584_s3 = inlined_call_operand.vmem [shape: f32[32,32], index: 3, kind: input, shape index: {}]   ;;  %s1585_s4 = inlined_call_operand.vmem [shape: f32[1,32], index: 4, kind: input, shape index: {}]   ;;  %s1586_s5 = inlined_call_operand.vmem [shape: f32[32,128], index: 5, kind: input, shape index: {}]   ;;  %s1587_s6 = inlined_call_operand.vmem [shape: f32[1,128], index: 6, kind: input, shape index: {}]   ;;  %s1588_s7 = inlined_call_operand.vmem [shape: f32[8,128], index: 7, kind: output, shape index: {}]  }
   0x1   :  { %1332 = vset.pattern.permute.xlu0 %v1354_v0  ;;  %v26_v1 = vld [vmem:[%s1581_s0] sm:$0xff]  ;;  %1333 = vset.pattern.permute.xlu1 %v1354_v0  ;;  %v28_v2 = vld [vmem:[%s1581_s0 + $0x10] sm:$0xff]  ;;  %v27_v3 = vld [vmem:[%s1581_s0 + $0x8] sm:$0xff]  ;;  %vm214_vm8 = vcmask 130048   ;;  %vm1357_vm9 = vmmov 0   ;;  %v1358_v62 = vmov 0.0  }
   0x2   :  { %37 = vperm.xlu0 %1332, %v26_v1   ;;  %43 = vperm.xlu1 %1333, %v28_v2   ;;  %v29_v4 = vld [vmem:[%s1581_s0 + $0x18] sm:$0xff]  ;;  %v84_v5 = vld [vmem:[%s1582_s1] sm:$0xff]  ;;  %v85_v6 = vld [vmem:[%s1582_s1 + $0x8] sm:$0xff]  ;;  %v35_v37 = vand.u32 127, %v34_v36  ;;  %vm349_vm10 = vcmask 261120  }
   0x3   :  { %v1243_v7 = vpack.c.bf16 %v85_v6, %v84_v5  ;;  %v86_v8 = vld [vmem:[%s1582_s1 + $0x10] sm:$0xff]  ;;  %v87_v9 = vld [vmem:[%s1582_s1 + $0x18] sm:$0xff]  ;;  %v88_v11 = vld [vmem:[%s1582_s1 + $0x20] sm:$0xff] }
   0x4   :  { %v1247_v10 = vpack.c.bf16 %v87_v9, %v86_v8  ;;  %v89_v12 = vld [vmem:[%s1582_s1 + $0x28] sm:$0xff]  ;;  %v30_v13 = vld [vmem:[%s1581_s0 + $0x20] sm:$0xff]  ;;  %v90_v16 = vld [vmem:[%s1582_s1 + $0x30] sm:$0xff] }
   0x5   :  { %v31_v14 = vld [vmem:[%s1581_s0 + $0x28] sm:$0xff]  ;;  %1244 = vmatprep.subr.bf16.mxu0 %v1243_v7  ;;  %v1251_v15 = vpack.c.bf16 %v89_v12, %v88_v11  ;;  %v91_v17 = vld [vmem:[%s1582_s1 + $0x38] sm:$0xff]  ;;  %v32_v18 = vld [vmem:[%s1581_s0 + $0x30] sm:$0xff] }
   0x6   :  { %40 = vperm.xlu0 %1332, %v27_v3   ;;  %46 = vperm.xlu1 %1333, %v29_v4   ;;  %v1255_v19 = vpack.c.bf16 %v91_v17, %v90_v16  ;;  %v92_v20 = vld [vmem:[%s1582_s1 + $0x40] sm:$0xff]  ;;  %v93_v21 = vld [vmem:[%s1582_s1 + $0x48] sm:$0xff]  ;;  %v33_v22 = vld [vmem:[%s1581_s0 + $0x38] sm:$0xff] }
   0x7   :  { %1246 = vmatpush3.bf16.msra.mxu0 %v1243_v7  ;;  %v1259_v23 = vpack.c.bf16 %v93_v21, %v92_v20  ;;  %v94_v24 = vld [vmem:[%s1582_s1 + $0x50] sm:$0xff]  ;;  %v95_v25 = vld [vmem:[%s1582_s1 + $0x58] sm:$0xff]  ;;  %v205_v26 = vld [vmem:[%s1583_s2] sm:$0xff] }
   0x8   :  { %1248 = vmatprep.subr.bf16.mxu0 %v1247_v10  ;;  %v206_v27 = vld [vmem:[%s1583_s2 + $0x8] sm:$0xff]  ;;  %v1263_v28 = vpack.c.bf16 %v95_v25, %v94_v24  ;;  %v96_v30 = vld [vmem:[%s1582_s1 + $0x60] sm:$0xff]  ;;  %v98_v33 = vld [vmem:[%s1582_s1 + $0x70] sm:$0xff] }
   0x9   :  { %v1275_v29 = vpack.c.bf16 %v206_v27, %v205_v26  ;;  %v97_v31 = vld [vmem:[%s1582_s1 + $0x68] sm:$0xff]  ;;  %v99_v34 = vld [vmem:[%s1582_s1 + $0x78] sm:$0xff]  ;;  %v344_v48 = vld [vmem:[%s1584_s3] sm:$0xff] }
   0xa   :  { %49 = vperm.xlu0 %1332, %v30_v13   ;;  %52 = vperm.xlu1 %1333, %v31_v14   ;;  %v1267_v32 = vpack.c.bf16 %v97_v31, %v96_v30  ;;  %v1271_v35 = vpack.c.bf16 %v99_v34, %v98_v33  ;;  %v345_v49 = vld [vmem:[%s1584_s3 + $0x8] sm:$0xff]  ;;  %v346_v59 = vld [vmem:[%s1584_s3 + $0x10] sm:$0xff]  ;;  %v347_v60 = vld [vmem:[%s1584_s3 + $0x18] sm:$0xff] }
   0xb   :  { %1250 = vmatpush3.bf16.msra.mxu0 %v1247_v10  ;;  %1276 = vmatprep.subr.bf16.mxu1 %v1275_v29  ;;  %v1486_v50 = vpack.c.bf16 %v345_v49, %v344_v48  ;;  %v1506_v61 = vpack.c.bf16 %v347_v60, %v346_v59  ;;  %v1003_v63 = vld [vmem:[%s1585_s4] ss:$0 sm:$0xff] }
   0xc   :  { %1252 = vmatprep.subr.bf16.mxu0 %v1251_v15  ;;  %1278 = vmatpush3.bf16.msra.mxu1 %v1275_v29 }
   0xd   :  { %1279 = vmatprep.subr.bf16.mxu1 %v1356_v47 }
   0xe   :  { %55 = vperm.xlu0 %1332, %v32_v18   ;;  %58 = vperm.xlu1 %1333, %v33_v22  }
   0xf   :  { %1254 = vmatpush3.bf16.msra.mxu0 %v1251_v15 }
  0x10   :  { %1256 = vmatprep.subr.bf16.mxu0 %v1255_v19 }
  0x13   :  { %1258 = vmatpush3.bf16.msra.mxu0 %v1255_v19 }
  0x14   :  { %1260 = vmatprep.subr.bf16.mxu0 %v1259_v23 }
  0x17   :  { %1262 = vmatpush3.bf16.msra.mxu0 %v1259_v23 }
  0x18   :  { %1264 = vmatprep.subr.bf16.mxu0 %v1263_v28 }
  0x1b   :  { %1266 = vmatpush3.bf16.msra.mxu0 %v1263_v28 }
  0x1c   :  { %1268 = vmatprep.subr.bf16.mxu0 %v1267_v32 }
  0x1f   :  { %1270 = vmatpush3.bf16.msra.mxu0 %v1267_v32 }
  0x20   :  { %1272 = vmatprep.subr.bf16.mxu0 %v1271_v35 }
  0x23   :  { %1274 = vmatpush3.bf16.msra.mxu0 %v1271_v35 }
  0x24   :  { %1303 = vmatprep.subr.bf16.mxu0 %v1356_v47 }
  0x81   :  { %v38_v38 = vpop.permute.xlu0 %37  ;;  %v44_v39 = vpop.permute.xlu1 %43 }
  0x82   :  { %vm60_vm0 = vcmp.eq.s32.totalorder %v35_v37, %v38_v38  ;;  %vm62_vm1 = vcmp.eq.s32.totalorder %v35_v37, %v44_v39 }
  0x83   :  { %1127 = vmatprep.mubr.msk.f32.mxu0 %vm60_vm0, %v1355_v40 }
  0x85   :  { %v41_v41 = vpop.permute.xlu0 %40  ;;  %v47_v42 = vpop.permute.xlu1 %46 }
  0x86   :  { %vm61_vm2 = vcmp.eq.s32.totalorder %v35_v37, %v41_v41  ;;  %vm63_vm3 = vcmp.eq.s32.totalorder %v35_v37, %v47_v42  ;;  %v875_v42 = vld [vmem:[%s1586_s5] sm:$0xff] }
  0x87   :  { %1128 = vmatmul.mubr.msk.f32.vlgmr.msra.gmra.mrb[0].mxu0 %vm61_vm2, %v1355_v40 }
  0x88   :  { %1130 = vmatprep.mubr.msk.f32.mxu0 %vm62_vm1, %v1355_v40  ;;  %1305 = vmatpush3.bf16.msra.mxu0 %v1486_v50 }
  0x89   :  { %v50_v43 = vpop.permute.xlu0 %49  ;;  %v53_v44 = vpop.permute.xlu1 %52  ;;  %1306 = vmatprep.subr.bf16.mxu0 %v1356_v47 }
  0x8a   :  { %vm64_vm4 = vcmp.eq.s32.totalorder %v35_v37, %v50_v43  ;;  %vm65_vm5 = vcmp.eq.s32.totalorder %v35_v37, %v53_v44  ;;  %v876_v43 = vld [vmem:[%s1586_s5 + $0x8] sm:$0xff]  ;;  %v877_v44 = vld [vmem:[%s1586_s5 + $0x10] sm:$0xff] }
  0x8b   :  { %1131 = vmatmul.mubr.msk.f32.gmra.mrb[2].mxu0 %vm63_vm3, %v1355_v40 }
  0x8c   :  { %1133 = vmatprep.mubr.msk.f32.mxu0 %vm64_vm4, %v1355_v40  ;;  %1308 = vmatpush3.bf16.msra.mxu0 %v1506_v61 }
  0x8d   :  { %v56_v45 = vpop.permute.xlu0 %55  ;;  %v59_v46 = vpop.permute.xlu1 %58  ;;  %1315 = vmatprep.subr.bf16.mxu0 %v1356_v47 }
  0x8e   :  { %vm66_vm6 = vcmp.eq.s32.totalorder %v35_v37, %v56_v45  ;;  %vm67_vm7 = vcmp.eq.s32.totalorder %v35_v37, %v59_v46  ;;  %v1322_v45 = vpack.c.bf16 %v876_v43, %v875_v42  ;;  %v878_v46 = vld [vmem:[%s1586_s5 + $0x18] sm:$0xff] }
  0x8f   :  { %1134 = vmatmul.mubr.msk.f32.gmra.mrb[4].mxu0 %vm65_vm5, %v1355_v40  ;;  %v1325_v48 = vpack.c.bf16 %v878_v46, %v877_v44 }
  0x90   :  { %1136 = vmatprep.mubr.msk.f32.mxu0 %vm66_vm6, %v1355_v40 }
  0x93   :  { %1137 = vmatmul.mubr.msk.f32.gmra.mrb[6].mxu0 %vm67_vm7, %v1355_v40 }
  0x94   :  { %1207 = vmatprep.mubr.msk.f32.mxu0 %vm1357_vm9, %v1358_v62 }
 0x15a   :  { %v1129_v51 = vpop.f32.mrb[0].mxu0 }
 0x15b   :  { %v166_v52 = vpop.f32.mrb[1].mxu0 }
 0x15c   :  { %1143 = vmatprep.mubr.msk.f32.mxu1 %vm214_vm8, %v166_v52 }
 0x15d   :  { %1144 = vmatmul.mubr.msk.f32.vlgmr.msra.gmra.mrb[0].mxu1 %vm214_vm8, %v1129_v51 }
 0x15e   :  { %v1132_v53 = vpop.f32.mrb[2].mxu0  ;;  %1281 = vmatpush3.bf16.msra.mxu1 %v1486_v50 }
 0x15f   :  { %v176_v54 = vpop.f32.mrb[3].mxu0  ;;  %1282 = vmatprep.subr.bf16.mxu1 %v1356_v47 }
 0x160   :  { %1146 = vmatprep.mubr.msk.f32.mxu1 %vm214_vm8, %v176_v54  ;;  %v1019_v54 = vld [vmem:[%s1587_s6] ss:$0 sm:$0xff] }
 0x161   :  { %1147 = vmatmul.mubr.msk.f32.gmra.mrb[2].mxu1 %vm214_vm8, %v1132_v53  ;;  %v960_v53 = vshrl.u32 %v34_v36, 7 }
 0x162   :  { %v1135_v55 = vpop.f32.mrb[4].mxu0  ;;  %1284 = vmatpush3.bf16.msra.mxu1 %v1506_v61 }
 0x163   :  { %v186_v56 = vpop.f32.mrb[5].mxu0  ;;  %1285 = vmatprep.subr.bf16.mxu1 %v1356_v47  ;;  %vm961_vm11 = vcmp.lt.s32.totalorder %v960_v53, 2 }
 0x164   :  { %1149 = vmatprep.mubr.msk.f32.mxu1 %vm214_vm8, %v186_v56 }
 0x165   :  { %1150 = vmatmul.mubr.msk.f32.gmra.mrb[4].mxu1 %vm214_vm8, %v1135_v55 }
 0x166   :  { %v1138_v57 = vpop.f32.mrb[6].mxu0 }
 0x167   :  { %v196_v58 = vpop.f32.mrb[7].mxu0 }
 0x168   :  { %1152 = vmatprep.mubr.msk.f32.mxu1 %vm214_vm8, %v196_v58 }
 0x169   :  { %1153 = vmatmul.mubr.msk.f32.gmra.mrb[6].mxu1 %vm214_vm8, %v1138_v57 }
 0x16a   :  { %1163 = vmatprep.mubr.msk.f32.mxu1 %vm1357_vm9, %v1358_v62 }
 0x230   :  { %v1145_v0 = vpop.f32.mrb[0].mxu1 }
 0x231   :  { %v311_v1 = vadd.f32 %v1145_v0, %v1003_v63  ;;  %v305_v2 = vpop.f32.mrb[1].mxu1 }
 0x232   :  { %v306_v3 = vadd.f32 %v1003_v63, %v305_v2 }
 0x234   :  { %1334 = vtanh.f32 %v306_v3  ;;  %v1148_v4 = vpop.f32.mrb[2].mxu1 }
 0x235   :  { %v321_v5 = vadd.f32 %v1148_v4, %v1003_v63  ;;  %v315_v6 = vpop.f32.mrb[3].mxu1 }
 0x236   :  { %v316_v7 = vadd.f32 %v1003_v63, %v315_v6 }
 0x238   :  { %v1151_v8 = vpop.f32.mrb[4].mxu1 }
 0x239   :  { %v331_v9 = vadd.f32 %v1151_v8, %v1003_v63  ;;  %v325_v10 = vpop.f32.mrb[5].mxu1 }
 0x23a   :  { %v326_v11 = vadd.f32 %v1003_v63, %v325_v10 }
 0x23c   :  { %v1154_v12 = vpop.f32.mrb[6].mxu1 }
 0x23d   :  { %v1519_v13 = vadd.f32 %v1154_v12, %v1003_v63  ;;  %v335_v14 = vpop.f32.mrb[7].mxu1 }
 0x23e   :  { %v1335_v15 = vpop.eup %1334  ;;  %v336_v16 = vadd.f32 %v1003_v63, %v335_v14 }
 0x23f   :  { %1164 = vmatmul.mubr.msk.f32.vlgmr.msra.gmra.mrb[8].mxu1 %vm349_vm10, %v1335_v15 }
 0x240   :  { %1287 = vmatpush3.bf16.msra.mxu1 %v1486_v50  ;;  %1174 = vmatprep.mubr.msk.f32.mxu1 %vm1357_vm9, %v1358_v62 }
 0x241   :  { %1288 = vmatprep.subr.bf16.mxu1 %v1356_v47 }
 0x244   :  { %1290 = vmatpush3.bf16.msra.mxu1 %v1506_v61 }
 0x245   :  { %1291 = vmatprep.subr.bf16.mxu1 %v1356_v47 }
 0x312   :  { %v419_v17 = vpop.f32.mrb[8].mxu1 }
 0x313   :  { %v423_v18 = vadd.f32 %v419_v17, %v311_v1  ;;  %v1165_v19 = vpop.f32.mrb[9].mxu1 }
 0x315   :  { %1336 = vtanh.f32 %v423_v18 }
 0x31f   :  { %v1337_v20 = vpop.eup %1336 }
 0x320   :  { %1175 = vmatmul.mubr.msk.f32.vlgmr.msra.gmra.mrb[10].mxu1 %vm349_vm10, %v1337_v20 }
 0x321   :  { %1293 = vmatpush3.bf16.msra.mxu1 %v1486_v50  ;;  %1185 = vmatprep.mubr.msk.f32.mxu1 %vm1357_vm9, %v1358_v62 }
 0x322   :  { %1294 = vmatprep.subr.bf16.mxu1 %v1356_v47 }
 0x325   :  { %1296 = vmatpush3.bf16.msra.mxu1 %v1506_v61 }
 0x326   :  { %1297 = vmatprep.subr.bf16.mxu1 %v1356_v47 }
 0x3f3   :  { %v494_v21 = vpop.f32.mrb[10].mxu1 }
 0x3f4   :  { %v498_v22 = vadd.f32 %v494_v21, %v316_v7  ;;  %v1176_v23 = vpop.f32.mrb[11].mxu1 }
 0x3f6   :  { %1338 = vtanh.f32 %v498_v22 }
 0x400   :  { %v1339_v24 = vpop.eup %1338 }
 0x401   :  { %1186 = vmatmul.mubr.msk.f32.vlgmr.msra.gmra.mrb[12].mxu1 %vm349_vm10, %v1339_v24 }
 0x402   :  { %1299 = vmatpush3.bf16.msra.mxu1 %v1486_v50  ;;  %1196 = vmatprep.mubr.msk.f32.mxu1 %vm1357_vm9, %v1358_v62 }
 0x403   :  { %1300 = vmatprep.subr.bf16.mxu1 %v1356_v47 }
 0x406   :  { %1302 = vmatpush3.bf16.msra.mxu1 %v1506_v61 }
 0x407   :  { %1309 = vmatprep.subr.bf16.mxu1 %v1356_v47 }
 0x4d4   :  { %v569_v25 = vpop.f32.mrb[12].mxu1 }
 0x4d5   :  { %v573_v26 = vadd.f32 %v569_v25, %v321_v5  ;;  %v1187_v27 = vpop.f32.mrb[13].mxu1 }
 0x4d7   :  { %1340 = vtanh.f32 %v573_v26 }
 0x4e1   :  { %v1341_v28 = vpop.eup %1340 }
 0x4e2   :  { %1197 = vmatmul.mubr.msk.f32.vlgmr.msra.gmra.mrb[14].mxu1 %vm349_vm10, %v1341_v28 }
 0x4e3   :  { %1311 = vmatpush3.bf16.msra.mxu1 %v1486_v50  ;;  %1218 = vmatprep.mubr.msk.f32.mxu1 %vm1357_vm9, %v1358_v62 }
 0x4e4   :  { %1312 = vmatprep.subr.bf16.mxu1 %v1356_v47 }
 0x4e7   :  { %1314 = vmatpush3.bf16.msra.mxu1 %v1506_v61 }
 0x4e8   :  { %1321 = vmatprep.subr.bf16.mxu1 %v1356_v47 }
 0x5b5   :  { %v644_v29 = vpop.f32.mrb[14].mxu1 }
 0x5b6   :  { %v648_v30 = vadd.f32 %v644_v29, %v326_v11  ;;  %v1198_v31 = vpop.f32.mrb[15].mxu1 }
 0x5b8   :  { %1342 = vtanh.f32 %v648_v30 }
 0x5c2   :  { %v1343_v32 = vpop.eup %1342 }
 0x5c3   :  { %1208 = vmatmul.mubr.msk.f32.vlgmr.msra.gmra.mrb[8].mxu0 %vm349_vm10, %v1343_v32 }
 0x5c4   :  { %1317 = vmatpush3.bf16.msra.mxu0 %v1486_v50  ;;  %1229 = vmatprep.mubr.msk.f32.mxu0 %vm1357_vm9, %v1358_v62 }
 0x5c5   :  { %1318 = vmatprep.subr.bf16.mxu0 %v1356_v47 }
 0x5c8   :  { %1320 = vmatpush3.bf16.msra.mxu0 %v1506_v61 }
 0x696   :  { %v719_v33 = vpop.f32.mrb[8].mxu0 }
 0x697   :  { %v723_v34 = vadd.f32 %v719_v33, %v331_v9  ;;  %v1209_v35 = vpop.f32.mrb[9].mxu0 }
 0x699   :  { %1344 = vtanh.f32 %v723_v34 }
 0x6a3   :  { %v1345_v37 = vpop.eup %1344 }
 0x6a4   :  { %1219 = vmatmul.mubr.msk.f32.vlgmr.msra.gmra.mrb[16].mxu1 %vm349_vm10, %v1345_v37 }
 0x6a5   :  { %1240 = vmatprep.mubr.msk.f32.mxu1 %vm1357_vm9, %v1358_v62  ;;  %1323 = vmatpush3.bf16.msra.mxu1 %v1322_v45 }
 0x6a6   :  { %1324 = vmatprep.subr.bf16.mxu1 %v1356_v47 }
 0x6a9   :  { %1326 = vmatpush3.bf16.msra.mxu1 %v1325_v48 }
 0x777   :  { %v794_v38 = vpop.f32.mrb[16].mxu1 }
 0x778   :  { %v798_v39 = vadd.f32 %v794_v38, %v336_v16  ;;  %v1220_v40 = vpop.f32.mrb[17].mxu1 }
 0x77a   :  { %1346 = vtanh.f32 %v798_v39 }
 0x784   :  { %v1347_v41 = vpop.eup %1346 }
 0x785   :  { %1230 = vmatmul.mubr.msk.f32.vlgmr.msra.gmra.mrb[10].mxu0 %vm349_vm10, %v1347_v41 }
 0x858   :  { %v869_v49 = vpop.f32.mrb[10].mxu0 }
 0x859   :  { %v873_v50 = vadd.f32 %v869_v49, %v1519_v13  ;;  %v1231_v51 = vpop.f32.mrb[11].mxu0 }
 0x85b   :  { %1348 = vtanh.f32 %v873_v50 }
 0x865   :  { %v1349_v52 = vpop.eup %1348 }
 0x866   :  { %1241 = vmatmul.mubr.msk.f32.vlgmr.msra.gmra.mrb[18].mxu1 %vm349_vm10, %v1349_v52 }
 0x939   :  { %v955_v55 = vpop.f32.mrb[18].mxu1 }
 0x93a   :  { %v956_v56 = vadd.f32 %v1019_v54, %v955_v55  ;;  %v1242_v57 = vpop.f32.mrb[19].mxu1 }
 0x93c   :  { %v962_v47 = vsel %vm961_vm11, %v956_v56, -1e+30 }
 0x93d   :  { %v963_v58 = vrot.slane %v962_v47, 4 }
 0x93f   :  { %v964_v59 = vmax.f32 %v962_v47, %v963_v58 }
 0x941   :  { %v965_v60 = vrot.slane %v964_v59, 2 }
 0x943   :  { %v966_v61 = vmax.f32 %v964_v59, %v965_v60 }
 0x945   :  { %v967_v62 = vrot.slane %v966_v61, 1 }
 0x947   :  { %v968_v63 = vmax.f32 %v966_v61, %v967_v62 }
 0x949   :  { %v969_v0 = vsub.f32 %v962_v47, %v968_v63 }
 0x94b   :  { %v970_v1 = vmul.f32 1.442695, %v969_v0 }
 0x94d   :  { %1350 = vpow2.f32 %v970_v1 }
 0x957   :  { %v1351_v2 = vpop.eup %1350 }
 0x958   :  { %v972_v36 = vrot.slane %v1351_v2, 4 }
 0x95a   :  { %v973_v3 = vadd.f32 %v1351_v2, %v972_v36 }
 0x95c   :  { %v974_v4 = vrot.slane %v973_v3, 2 }
 0x95e   :  { %v975_v5 = vadd.f32 %v974_v4, %v973_v3 }
 0x960   :  { %v976_v6 = vrot.slane %v975_v5, 1 }
 0x962   :  { %v977_v7 = vadd.f32 %v976_v6, %v975_v5 }
 0x964   :  { %1352 = vlog2.f32 %v977_v7 }
 0x96e   :  { %v1353_v8 = vpop.eup %1352 }
 0x96f   :  { %v979_v9 = vmul.f32 0.6931472, %v1353_v8 }
 0x971   :  { %v980_v10 = vadd.f32 %v979_v9, %v968_v63 }
 0x973   :  { %v981_v11 = vsub.f32 %v956_v56, %v980_v10 }
 0x975   :  { %982 = vst [vmem:[%s1588_s7] sm:$0xff] %v981_v11 }

</bundles_post_ra>
